<compile_context>
chip_gen: v6e
topology: v6e:2x2x1
jax: 0.10.0
libtpu: 0.0.40
codegen_flags: <defaults>
</compile_context>

<pallas_src>
import functools

import jax
import jax.numpy as jnp
from jax import lax
from jax.experimental import pallas as pl
from jax.experimental.pallas import tpu as pltpu

LEAKY_SLOPE = 0.2
BN_EPS = 1e-5
H1, H2 = 128, 256
MAX_TILE_ROWS = 2048           # multiple of 16 (bf16 output sublane packing)
VMEM_LIMIT = 32 * 1024 * 1024


def _round_up(x, m):
    return ((x + m - 1) // m) * m


def _leaky(x):
    return jnp.where(x > 0, x, LEAKY_SLOPE * x)


def _linear(x, w_ref, b_ref):
    # bf16 operands on the MXU, f32 accumulation; bias add in f32.
    return jnp.dot(x.astype(jnp.bfloat16), w_ref[...],
                   preferred_element_type=jnp.float32) + b_ref[...]


def _mask_rows(h, rows, batch):
    # Zero padded batch rows so they do not contribute to BN statistics.
    return jnp.where(rows < batch, h, 0.0)


def _tile_row_ids(tile_rows):
    t = pl.program_id(0)
    return t * tile_rows + lax.broadcasted_iota(jnp.int32, (tile_rows, 1), 0)


def _sum_sumsq(h):
    return jnp.concatenate([jnp.sum(h, axis=0, keepdims=True),
                            jnp.sum(h * h, axis=0, keepdims=True)], axis=0)


def _fold_bn(mean, meansq, gamma, beta):
    """Fold training-mode BN (biased variance) into a single scale/shift."""
    var = jnp.maximum(meansq - mean * mean, 0.0)
    scale = gamma * lax.rsqrt(var + BN_EPS)
    shift = beta - mean * scale
    return scale, shift


def _bn_scale_shift(stats, gamma, beta, n):
    return _fold_bn(stats[0:1] / n, stats[1:2] / n, gamma, beta)


# ---------------------------------------------------------------------------
# Fused fast path: whole batch in one tile -> stats + BN folds + forward in
# a single kernel invocation (no grid).
# ---------------------------------------------------------------------------
def _fused_kernel(z_ref, w1_ref, b1_ref, g1_ref, be1_ref,
                  w2_ref, b2_ref, g2_ref, be2_ref, w3_ref, b3_ref,
                  o_ref, *, batch, need_mask, tile_rows):
    inv_n = 1.0 / batch
    if need_mask:
        rows = lax.broadcasted_iota(jnp.int32, (tile_rows, 1), 0)

    h = _leaky(_linear(z_ref[...], w1_ref, b1_ref))
    hs = _mask_rows(h, rows, batch) if need_mask else h
    sc1, sh1 = _fold_bn(jnp.sum(hs, axis=0, keepdims=True) * inv_n,
                        jnp.sum(hs * hs, axis=0, keepdims=True) * inv_n,
                        g1_ref[...], be1_ref[...])
    h = h * sc1 + sh1

    h = _leaky(_linear(h, w2_ref, b2_ref))
    hs = _mask_rows(h, rows, batch) if need_mask else h
    sc2, sh2 = _fold_bn(jnp.sum(hs, axis=0, keepdims=True) * inv_n,
                        jnp.sum(hs * hs, axis=0, keepdims=True) * inv_n,
                        g2_ref[...], be2_ref[...])
    h = h * sc2 + sh2

    h = _linear(h, w3_ref, b3_ref)
    o_ref[...] = jnp.tanh(h).astype(o_ref.dtype)


# ---------------------------------------------------------------------------
# Multi-tile path (B > tile cap): 3 batch-tiled passes.
#   Pass 1/2 write per-tile partial sum/sumsq blocks ("parallel" grid axis,
#   wrapper tree-reduces).  Pass 3 is the full forward with BN folded.
# ---------------------------------------------------------------------------
def _stats1_kernel(z_ref, w1_ref, b1_ref, s1_ref, *, tile_rows, batch, need_mask):
    h = _leaky(_linear(z_ref[...], w1_ref, b1_ref))
    if need_mask:
        # Only the last tile has padded rows; the select is ~1% of the matmul
        # cost, so it is applied unconditionally (compile-time gated).
        h = _mask_rows(h, _tile_row_ids(tile_rows), batch)
    s1_ref[...] = _sum_sumsq(h)[None]


def _stats2_kernel(z_ref, w1_ref, b1_ref, sc1_ref, sh1_ref, w2_ref, b2_ref,
                   s2_ref, *, tile_rows, batch, need_mask):
    h = _leaky(_linear(z_ref[...], w1_ref, b1_ref))
    h = h * sc1_ref[...] + sh1_ref[...]
    h = _leaky(_linear(h, w2_ref, b2_ref))
    if need_mask:
        h = _mask_rows(h, _tile_row_ids(tile_rows), batch)
    s2_ref[...] = _sum_sumsq(h)[None]


def _final_kernel(z_ref, w1_ref, b1_ref, sc1_ref, sh1_ref,
                  w2_ref, b2_ref, sc2_ref, sh2_ref, w3_ref, b3_ref, o_ref):
    h = _leaky(_linear(z_ref[...], w1_ref, b1_ref))
    h = h * sc1_ref[...] + sh1_ref[...]
    h = _leaky(_linear(h, w2_ref, b2_ref))
    h = h * sc2_ref[...] + sh2_ref[...]
    h = _linear(h, w3_ref, b3_ref)
    o_ref[...] = jnp.tanh(h).astype(o_ref.dtype)


# ---------------------------------------------------------------------------
# Wrappers
# ---------------------------------------------------------------------------
def prepare_params(params):
    """One-time device-side prep (hoisted out of the per-call hot path):
    bf16 weights for the MXU; output layer zero-padded to a 128-lane multiple
    so the final store is lane-dense."""
    out_dim = params["w3"].shape[1]
    out_p = _round_up(out_dim, 128)
    pad_w = ((0, 0), (0, out_p - out_dim))
    return {
        "w1": params["w1"].astype(jnp.bfloat16), "b1": params["b1"],
        "g1": params["g1"], "be1": params["be1"],
        "w2": params["w2"].astype(jnp.bfloat16), "b2": params["b2"],
        "g2": params["g2"], "be2": params["be2"],
        "w3": jnp.pad(params["w3"], pad_w).astype(jnp.bfloat16),
        "b3": jnp.pad(params["b3"], pad_w),
        "out_dim": int(out_dim),
    }


def generator_forward(z, prepped, *, max_tile_rows=MAX_TILE_ROWS):
    """z: (B, latent_dim) float32; prepped: prepare_params() output.
    Returns (B, output_dim) float32."""
    b, latent = z.shape
    out_dim = prepped["out_dim"]
    w1, b1, g1, be1 = prepped["w1"], prepped["b1"], prepped["g1"], prepped["be1"]
    w2, b2, g2, be2 = prepped["w2"], prepped["b2"], prepped["g2"], prepped["be2"]
    w3, b3 = prepped["w3"], prepped["b3"]
    out_p = w3.shape[1]

    flops_per_row = 2 * (latent * H1 + H1 * H2 + H2 * out_p)
    weight_bytes = ((w1.size + w2.size + w3.size) * 2
                    + (b1.size + b2.size + b3.size) * 4)

    # ---- Fast path: whole batch fits in one tile -> single fused kernel. ----
    if b <= max_tile_rows:
        tb = _round_up(b, 8)
        need_mask = tb != b
        z_p = jnp.pad(z, ((0, tb - b), (0, 0))) if need_mask else z
        out = pl.pallas_call(
            functools.partial(_fused_kernel, batch=b, need_mask=need_mask,
                              tile_rows=tb),
            out_shape=jax.ShapeDtypeStruct((tb, out_p), jnp.bfloat16),
            compiler_params=pltpu.CompilerParams(vmem_limit_bytes=VMEM_LIMIT),
            cost_estimate=pl.CostEstimate(
                flops=tb * flops_per_row,
                transcendentals=tb * out_p + 2 * (H1 + H2),
                bytes_accessed=int(z_p.size) * 4 + int(weight_bytes)
                               + tb * out_p * 2),
        )(z_p, w1, b1, g1, be1, w2, b2, g2, be2, w3, b3)
        return out[:b, :out_dim].astype(jnp.float32)

    # ---- Multi-tile path: balanced tiles, >= 2 grid steps (megacore). -------
    n_tiles = pl.cdiv(b, max_tile_rows)
    tb = _round_up(pl.cdiv(b, n_tiles), 16)   # 16: bf16 output sublane packing
    n_tiles = pl.cdiv(b, tb)
    b_pad = n_tiles * tb
    need_mask = b_pad != b
    z_p = jnp.pad(z, ((0, b_pad - b), (0, 0))) if need_mask else z

    row_spec = lambda f: pl.BlockSpec((tb, f), lambda t: (t, 0))
    par_spec = lambda shape: pl.BlockSpec(shape, lambda t: (0,) * len(shape))
    cp_par = pltpu.CompilerParams(dimension_semantics=("parallel",),
                                  vmem_limit_bytes=VMEM_LIMIT)

    # Pass 1: per-tile layer-1 sum / sum-of-squares partials.
    parts1 = pl.pallas_call(
        functools.partial(_stats1_kernel, tile_rows=tb, batch=b,
                          need_mask=need_mask),
        out_shape=jax.ShapeDtypeStruct((n_tiles, 2, H1), jnp.float32),
        grid=(n_tiles,),
        in_specs=[row_spec(latent), par_spec((latent, H1)), par_spec((1, H1))],
        out_specs=pl.BlockSpec((1, 2, H1), lambda t: (t, 0, 0)),
        compiler_params=cp_par,
        cost_estimate=pl.CostEstimate(
            flops=2 * b_pad * latent * H1, transcendentals=0,
            bytes_accessed=int(z_p.size) * 4 + int(w1.size) * 2
                           + n_tiles * 2 * H1 * 4),
    )(z_p, w1, b1)
    sc1, sh1 = _bn_scale_shift(jnp.sum(parts1, axis=0), g1, be1, b)

    # Pass 2: per-tile layer-2 partials (layer 1 recomputed, BN1 folded).
    parts2 = pl.pallas_call(
        functools.partial(_stats2_kernel, tile_rows=tb, batch=b,
                          need_mask=need_mask),
        out_shape=jax.ShapeDtypeStruct((n_tiles, 2, H2), jnp.float32),
        grid=(n_tiles,),
        in_specs=[row_spec(latent), par_spec((latent, H1)), par_spec((1, H1)),
                  par_spec((1, H1)), par_spec((1, H1)),
                  par_spec((H1, H2)), par_spec((1, H2))],
        out_specs=pl.BlockSpec((1, 2, H2), lambda t: (t, 0, 0)),
        compiler_params=cp_par,
        cost_estimate=pl.CostEstimate(
            flops=2 * b_pad * (latent * H1 + H1 * H2), transcendentals=0,
            bytes_accessed=int(z_p.size) * 4
                           + (int(w1.size) + int(w2.size)) * 2
                           + n_tiles * 2 * H2 * 4),
    )(z_p, w1, b1, sc1, sh1, w2, b2)
    sc2, sh2 = _bn_scale_shift(jnp.sum(parts2, axis=0), g2, be2, b)

    # Pass 3: full forward with both BN layers folded; lane-dense bf16 output.
    out = pl.pallas_call(
        _final_kernel,
        out_shape=jax.ShapeDtypeStruct((b_pad, out_p), jnp.bfloat16),
        grid=(n_tiles,),
        in_specs=[row_spec(latent), par_spec((latent, H1)), par_spec((1, H1)),
                  par_spec((1, H1)), par_spec((1, H1)),
                  par_spec((H1, H2)), par_spec((1, H2)),
                  par_spec((1, H2)), par_spec((1, H2)),
                  par_spec((H2, out_p)), par_spec((1, out_p))],
        out_specs=pl.BlockSpec((tb, out_p), lambda t: (t, 0)),
        compiler_params=cp_par,
        cost_estimate=pl.CostEstimate(
            flops=b_pad * flops_per_row,
            transcendentals=b_pad * out_p,
            bytes_accessed=int(z_p.size) * 4 + int(weight_bytes)
                           + b_pad * out_p * 2),
    )(z_p, w1, b1, sc1, sh1, w2, b2, sc2, sh2, w3, b3)

    return out[:b, :out_dim].astype(jnp.float32)


def init_params(key, latent_dim, output_dim):
    """PyTorch-default-style init (uniform +/- 1/sqrt(fan_in)).
    Linear weights stored transposed as (in, out); biases / BN params (1, F)."""
    dims = [(latent_dim, H1), (H1, H2), (H2, output_dim)]
    params = {}
    for i, (fin, fout) in enumerate(dims, start=1):
        key, kw, kb = jax.random.split(key, 3)
        bound = 1.0 / jnp.sqrt(jnp.float32(fin))
        params[f"w{i}"] = jax.random.uniform(
            kw, (fin, fout), jnp.float32, minval=-bound, maxval=bound)
        params[f"b{i}"] = jax.random.uniform(
            kb, (1, fout), jnp.float32, minval=-bound, maxval=bound)
    params["g1"] = jnp.ones((1, H1), jnp.float32)
    params["be1"] = jnp.zeros((1, H1), jnp.float32)
    params["g2"] = jnp.ones((1, H2), jnp.float32)
    params["be2"] = jnp.zeros((1, H2), jnp.float32)
    return params


def reference_forward(z, params):
    """Pure-JAX reference mirroring the kernel's bf16-operand / f32-accum
    matmuls and the bf16 output store."""
    def lin(x, w, b):
        return jnp.dot(x.astype(jnp.bfloat16), w.astype(jnp.bfloat16),
                       preferred_element_type=jnp.float32) + b

    def bn(x, g, be):
        m = jnp.mean(x, 0, keepdims=True)
        v = jnp.maximum(jnp.mean(x * x, 0, keepdims=True) - m * m, 0.0)
        scale = g * lax.rsqrt(v + BN_EPS)
        return x * scale + (be - m * scale)

    h = _leaky(lin(z, params["w1"], params["b1"]))
    h = bn(h, params["g1"], params["be1"])
    h = _leaky(lin(h, params["w2"], params["b2"]))
    h = bn(h, params["g2"], params["be2"])
    h = lin(h, params["w3"], params["b3"])
    return jnp.tanh(h).astype(jnp.bfloat16).astype(jnp.float32)


if __name__ == "__main__":
    latent_dim = 16
    output_dim = 32
    batch = 8

    key = jax.random.PRNGKey(0)
    key, kz = jax.random.split(key)
    z = jax.random.normal(kz, (batch, latent_dim), jnp.float32)
    params = init_params(key, latent_dim, output_dim)
    dev_params = prepare_params(params)

    # Fused single-kernel fast path (B <= MAX_TILE_ROWS).
    out = jax.block_until_ready(generator_forward(z, dev_params))
    assert out.shape == (batch, output_dim)
    ref = reference_forward(z, params)
    err = float(jnp.max(jnp.abs(out - ref)))
    assert err < 1e-2, f"fused path mismatch vs JAX reference: {err}"

    # Multi-tile path (forced with a tiny tile cap; exercises batch padding,
    # per-tile partial BN statistics and the tiled final pass).
    batch2 = 20
    key, kz2 = jax.random.split(key)
    z2 = jax.random.normal(kz2, (batch2, latent_dim), jnp.float32)
    out2 = jax.block_until_ready(
        generator_forward(z2, dev_params, max_tile_rows=8))
    assert out2.shape == (batch2, output_dim)
    ref2 = reference_forward(z2, params)
    err2 = float(jnp.max(jnp.abs(out2 - ref2)))
    assert err2 < 1e-2, f"tiled path mismatch vs JAX reference: {err2}"

    print("KERNEL_OK")
</pallas_src>

<mosaic_0001>
module attributes {stable_mosaic.version = 11 : i64} {
  func.func @_fused_kernel(%arg0: memref<8x16xf32, #tpu.memory_space<vmem>>, %arg1: memref<16x128xbf16, #tpu.memory_space<vmem>>, %arg2: memref<1x128xf32, #tpu.memory_space<vmem>>, %arg3: memref<1x128xf32, #tpu.memory_space<vmem>>, %arg4: memref<1x128xf32, #tpu.memory_space<vmem>>, %arg5: memref<128x256xbf16, #tpu.memory_space<vmem>>, %arg6: memref<1x256xf32, #tpu.memory_space<vmem>>, %arg7: memref<1x256xf32, #tpu.memory_space<vmem>>, %arg8: memref<1x256xf32, #tpu.memory_space<vmem>>, %arg9: memref<256x128xbf16, #tpu.memory_space<vmem>>, %arg10: memref<1x128xf32, #tpu.memory_space<vmem>>, %arg11: memref<8x128xbf16, #tpu.memory_space<vmem>>) attributes {dimension_semantics = [], scalar_prefetch = 0 : i64, scratch_operands = 0 : i64, tpu.core_type = #tpu.core_type<tc>} {
    %c0 = arith.constant 0 : index
    %c0_0 = arith.constant 0 : index
    %0 = vector.load %arg0[%c0, %c0_0] : memref<8x16xf32, #tpu.memory_space<vmem>>, vector<8x16xf32>
    %1 = arith.truncf %0 : vector<8x16xf32> to vector<8x16xbf16>
    %c0_1 = arith.constant 0 : index
    %c0_2 = arith.constant 0 : index
    %2 = vector.load %arg1[%c0_1, %c0_2] : memref<16x128xbf16, #tpu.memory_space<vmem>>, vector<16x128xbf16>
    %cst = arith.constant dense<0.000000e+00> : vector<8x128xf32>
    %3 = tpu.matmul %1, %2, %cst {dimension_numbers = #tpu.dot_dimension_numbers<[1], [0], [0], [1], [0, 0, 1, 1], [], []>} : vector<8x16xbf16>, vector<16x128xbf16>, vector<8x128xf32> -> vector<8x128xf32>
    %c0_3 = arith.constant 0 : index
    %c0_4 = arith.constant 0 : index
    %4 = vector.load %arg2[%c0_3, %c0_4] : memref<1x128xf32, #tpu.memory_space<vmem>>, vector<1x128xf32>
    %5 = vector.broadcast %4 : vector<1x128xf32> to vector<8x128xf32>
    %6 = arith.addf %3, %5 : vector<8x128xf32>
    %cst_5 = arith.constant 0.000000e+00 : f32
    %7 = vector.broadcast %cst_5 : f32 to vector<8x128xf32>
    %8 = arith.cmpf ogt, %6, %7 : vector<8x128xf32>
    %cst_6 = arith.constant 2.000000e-01 : f32
    %9 = vector.broadcast %cst_6 : f32 to vector<8x128xf32>
    %10 = arith.mulf %9, %6 : vector<8x128xf32>
    %11 = arith.select %8, %6, %10 : vector<8x128xi1>, vector<8x128xf32>
    %cst_7 = arith.constant dense<0.000000e+00> : vector<128xf32>
    %12 = vector.multi_reduction <add>, %11, %cst_7 [0] : vector<8x128xf32> to vector<128xf32>
    %13 = vector.shape_cast %12 : vector<128xf32> to vector<1x128xf32>
    %cst_8 = arith.constant 1.250000e-01 : f32
    %14 = vector.broadcast %cst_8 : f32 to vector<1x128xf32>
    %15 = arith.mulf %13, %14 : vector<1x128xf32>
    %16 = arith.mulf %11, %11 : vector<8x128xf32>
    %cst_9 = arith.constant dense<0.000000e+00> : vector<128xf32>
    %17 = vector.multi_reduction <add>, %16, %cst_9 [0] : vector<8x128xf32> to vector<128xf32>
    %18 = vector.shape_cast %17 : vector<128xf32> to vector<1x128xf32>
    %cst_10 = arith.constant 1.250000e-01 : f32
    %19 = vector.broadcast %cst_10 : f32 to vector<1x128xf32>
    %20 = arith.mulf %18, %19 : vector<1x128xf32>
    %c0_11 = arith.constant 0 : index
    %c0_12 = arith.constant 0 : index
    %21 = vector.load %arg3[%c0_11, %c0_12] : memref<1x128xf32, #tpu.memory_space<vmem>>, vector<1x128xf32>
    %c0_13 = arith.constant 0 : index
    %c0_14 = arith.constant 0 : index
    %22 = vector.load %arg4[%c0_13, %c0_14] : memref<1x128xf32, #tpu.memory_space<vmem>>, vector<1x128xf32>
    %23 = arith.mulf %15, %15 : vector<1x128xf32>
    %24 = arith.subf %20, %23 : vector<1x128xf32>
    %cst_15 = arith.constant 0.000000e+00 : f32
    %25 = vector.broadcast %cst_15 : f32 to vector<1x128xf32>
    %26 = arith.maximumf %24, %25 : vector<1x128xf32>
    %cst_16 = arith.constant 9.99999974E-6 : f32
    %27 = vector.broadcast %cst_16 : f32 to vector<1x128xf32>
    %28 = arith.addf %26, %27 : vector<1x128xf32>
    %29 = math.rsqrt %28 : vector<1x128xf32>
    %30 = arith.mulf %21, %29 : vector<1x128xf32>
    %31 = arith.mulf %15, %30 : vector<1x128xf32>
    %32 = arith.subf %22, %31 : vector<1x128xf32>
    %33 = vector.broadcast %30 : vector<1x128xf32> to vector<8x128xf32>
    %34 = arith.mulf %11, %33 : vector<8x128xf32>
    %35 = vector.broadcast %32 : vector<1x128xf32> to vector<8x128xf32>
    %36 = arith.addf %34, %35 : vector<8x128xf32>
    %37 = arith.truncf %36 : vector<8x128xf32> to vector<8x128xbf16>
    %c0_17 = arith.constant 0 : index
    %c0_18 = arith.constant 0 : index
    %38 = vector.load %arg5[%c0_17, %c0_18] : memref<128x256xbf16, #tpu.memory_space<vmem>>, vector<128x256xbf16>
    %cst_19 = arith.constant dense<0.000000e+00> : vector<8x256xf32>
    %39 = tpu.matmul %37, %38, %cst_19 {dimension_numbers = #tpu.dot_dimension_numbers<[1], [0], [0], [1], [0, 0, 1, 1], [], []>} : vector<8x128xbf16>, vector<128x256xbf16>, vector<8x256xf32> -> vector<8x256xf32>
    %c0_20 = arith.constant 0 : index
    %c0_21 = arith.constant 0 : index
    %40 = vector.load %arg6[%c0_20, %c0_21] : memref<1x256xf32, #tpu.memory_space<vmem>>, vector<1x256xf32>
    %41 = vector.broadcast %40 : vector<1x256xf32> to vector<8x256xf32>
    %42 = arith.addf %39, %41 : vector<8x256xf32>
    %cst_22 = arith.constant 0.000000e+00 : f32
    %43 = vector.broadcast %cst_22 : f32 to vector<8x256xf32>
    %44 = arith.cmpf ogt, %42, %43 : vector<8x256xf32>
    %cst_23 = arith.constant 2.000000e-01 : f32
    %45 = vector.broadcast %cst_23 : f32 to vector<8x256xf32>
    %46 = arith.mulf %45, %42 : vector<8x256xf32>
    %47 = arith.select %44, %42, %46 : vector<8x256xi1>, vector<8x256xf32>
    %cst_24 = arith.constant dense<0.000000e+00> : vector<256xf32>
    %48 = vector.multi_reduction <add>, %47, %cst_24 [0] : vector<8x256xf32> to vector<256xf32>
    %49 = vector.shape_cast %48 : vector<256xf32> to vector<1x256xf32>
    %cst_25 = arith.constant 1.250000e-01 : f32
    %50 = vector.broadcast %cst_25 : f32 to vector<1x256xf32>
    %51 = arith.mulf %49, %50 : vector<1x256xf32>
    %52 = arith.mulf %47, %47 : vector<8x256xf32>
    %cst_26 = arith.constant dense<0.000000e+00> : vector<256xf32>
    %53 = vector.multi_reduction <add>, %52, %cst_26 [0] : vector<8x256xf32> to vector<256xf32>
    %54 = vector.shape_cast %53 : vector<256xf32> to vector<1x256xf32>
    %cst_27 = arith.constant 1.250000e-01 : f32
    %55 = vector.broadcast %cst_27 : f32 to vector<1x256xf32>
    %56 = arith.mulf %54, %55 : vector<1x256xf32>
    %c0_28 = arith.constant 0 : index
    %c0_29 = arith.constant 0 : index
    %57 = vector.load %arg7[%c0_28, %c0_29] : memref<1x256xf32, #tpu.memory_space<vmem>>, vector<1x256xf32>
    %c0_30 = arith.constant 0 : index
    %c0_31 = arith.constant 0 : index
    %58 = vector.load %arg8[%c0_30, %c0_31] : memref<1x256xf32, #tpu.memory_space<vmem>>, vector<1x256xf32>
    %59 = arith.mulf %51, %51 : vector<1x256xf32>
    %60 = arith.subf %56, %59 : vector<1x256xf32>
    %cst_32 = arith.constant 0.000000e+00 : f32
    %61 = vector.broadcast %cst_32 : f32 to vector<1x256xf32>
    %62 = arith.maximumf %60, %61 : vector<1x256xf32>
    %cst_33 = arith.constant 9.99999974E-6 : f32
    %63 = vector.broadcast %cst_33 : f32 to vector<1x256xf32>
    %64 = arith.addf %62, %63 : vector<1x256xf32>
    %65 = math.rsqrt %64 : vector<1x256xf32>
    %66 = arith.mulf %57, %65 : vector<1x256xf32>
    %67 = arith.mulf %51, %66 : vector<1x256xf32>
    %68 = arith.subf %58, %67 : vector<1x256xf32>
    %69 = vector.broadcast %66 : vector<1x256xf32> to vector<8x256xf32>
    %70 = arith.mulf %47, %69 : vector<8x256xf32>
    %71 = vector.broadcast %68 : vector<1x256xf32> to vector<8x256xf32>
    %72 = arith.addf %70, %71 : vector<8x256xf32>
    %73 = arith.truncf %72 : vector<8x256xf32> to vector<8x256xbf16>
    %c0_34 = arith.constant 0 : index
    %c0_35 = arith.constant 0 : index
    %74 = vector.load %arg9[%c0_34, %c0_35] : memref<256x128xbf16, #tpu.memory_space<vmem>>, vector<256x128xbf16>
    %cst_36 = arith.constant dense<0.000000e+00> : vector<8x128xf32>
    %75 = tpu.matmul %73, %74, %cst_36 {dimension_numbers = #tpu.dot_dimension_numbers<[1], [0], [0], [1], [0, 0, 1, 1], [], []>} : vector<8x256xbf16>, vector<256x128xbf16>, vector<8x128xf32> -> vector<8x128xf32>
    %c0_37 = arith.constant 0 : index
    %c0_38 = arith.constant 0 : index
    %76 = vector.load %arg10[%c0_37, %c0_38] : memref<1x128xf32, #tpu.memory_space<vmem>>, vector<1x128xf32>
    %77 = vector.broadcast %76 : vector<1x128xf32> to vector<8x128xf32>
    %78 = arith.addf %75, %77 : vector<8x128xf32>
    %79 = math.tanh %78 : vector<8x128xf32>
    %80 = arith.truncf %79 : vector<8x128xf32> to vector<8x128xbf16>
    %c0_39 = arith.constant 0 : index
    %c0_40 = arith.constant 0 : index
    %81 = vector.load %arg11[%c0_39, %c0_40] : memref<8x128xbf16, #tpu.memory_space<vmem>>, vector<8x128xbf16>
    tpu.vector_store %arg11[%c0_39, %c0_40], %80 {strides = array<i32>} : memref<8x128xbf16, #tpu.memory_space<vmem>>, vector<8x128xbf16>,
    return
  }
}

</mosaic_0001>

<bundles_post_ra>
// kernel: tpu_custom_call.1
= control target key start
LH: loop header
LB: loop body
LE: loop exit
PB: predicated region body
PF: predicated region fallthrough
CT: control target
= control target key end

     0   :  { %16 = vsyncpa [#allocation3], 0  ;;  %s1102_s0 = inlined_call_operand.hbm [shape: f32[8,16], index: 0, kind: input, shape index: {}]   ;;  %s1103_s1 = inlined_call_operand.hbm [shape: bf16[16,128], index: 1, kind: input, shape index: {}]   ;;  %s1104_s2 = inlined_call_operand.vmem [shape: f32[1,128], index: 2, kind: input, shape index: {}]   ;;  %s1105_s3 = inlined_call_operand.hbm [shape: f32[1,128], index: 3, kind: input, shape index: {}]   ;;  %s1106_s4 = inlined_call_operand.hbm [shape: f32[1,128], index: 4, kind: input, shape index: {}]   ;;  %s1107_s5 = inlined_call_operand.hbm [shape: bf16[128,256], index: 5, kind: input, shape index: {}]   ;;  %s1108_s6 = inlined_call_operand.vmem [shape: f32[1,256], index: 6, kind: input, shape index: {}]   ;;  %s1109_s7 = inlined_call_operand.vmem [shape: f32[1,256], index: 7, kind: input, shape index: {}]   ;;  %s1110_s8 = inlined_call_operand.vmem [shape: f32[1,256], index: 8, kind: input, shape index: {}]   ;;  %s1111_s9 = inlined_call_operand.hbm [shape: bf16[256,128], index: 9, kind: input, shape index: {}]   ;;  %s1112_s10 = inlined_call_operand.vmem [shape: f32[1,128], index: 10, kind: input, shape index: {}]   ;;  %s1113_s11 = inlined_call_operand.hbm [shape: bf16[8,128], index: 11, kind: output, shape index: {}]  }
   0x1   :  { %17 = vsyncpa [#allocation6], 0 }
   0x2   :  { %18 = vsyncpa [#allocation9], 0 }
   0x3   :  { %19 = vsyncpa [#allocation12], 0 }
   0x4   :  { %20 = vsyncpa [#allocation4], 0  ;;  %s961_s17 = smov [#allocation5]  }
   0x5   :  { %s36_s18 = sshll.u32 %s961_s17, 4  ;;  %s37_s18 = int_to_ptr.vmem [resolvable:$true] %s36_s18 }
   0x6   :  { %s819_s19 = scalar_lea.vmem %s37_s18, 128  ;;  %p824_p1 = scmp.lt.s32.totalorder %s37_s18, %s37_s18 }
   0x7   :  { %p820_p0 = scmp.ne.s32.totalorder %s37_s18, %s819_s19  ;;  %p825_p2 = scmp.lt.s32.totalorder %s819_s19, %s819_s19 }
   0x9   :  { %p826_p3 = por %p825_p2, %p824_p1 }
   0xb   :  { %p827_p4 = pnand %p826_p3, %p820_p0 }
   0xd   :  { %830 = shalt.err (!%p827_p4)
}
   0xe   :  { %s962_s20 = smov 64   ;;  %s963_s21 = smov 4  }
   0xf   :  { %42 = dma.hbm_to_vmem [thread:$0]  %s1103_s1, 128, %s37_s18, [#allocation6], %s962_s20, %s962_s20, %s963_s21  }
  0x10   :  { %s964_s24 = smov [#allocation8]   ;;  %s965_s26 = smov [#allocation2]  }
  0x11   :  { %s61_s25 = sshll.u32 %s964_s24, 4  ;;  %s27_s27 = sshll.u32 %s965_s26, 4  ;;  %s62_s25 = int_to_ptr.vmem [resolvable:$true] %s61_s25  ;;  %s28_s27 = int_to_ptr.vmem [resolvable:$true] %s27_s27 }
  0x12   :  { %s839_s28 = scalar_lea.vmem %s62_s25, 16  ;;  %s843_s29 = scalar_lea.vmem %s62_s25, 32 }
  0x13   :  { %p840_p5 = scmp.ne.s32.totalorder %s62_s25, %s839_s28  ;;  %p844_p6 = scmp.lt.s32.totalorder %s62_s25, %s62_s25 }
  0x14   :  { %p845_p7 = scmp.lt.s32.totalorder %s843_s29, %s839_s28 }
  0x16   :  { %p846_p8 = por %p845_p7, %p844_p6 }
  0x18   :  { %p847_p9 = pnand %p846_p8, %p840_p5 }
  0x1a   :  { %850 = shalt.err (!%p847_p9)
}
  0x1b   :  { %64 = dma.hbm_to_vmem [thread:$0]  %s1106_s4, 16, %s62_s25, [#allocation9]  }
  0x1c   :  { %s859_s13 = scalar_lea.vmem %s28_s27, 128  ;;  %p864_p11 = scmp.lt.s32.totalorder %s28_s27, %s28_s27 }
  0x1d   :  { %p860_p10 = scmp.ne.s32.totalorder %s28_s27, %s859_s13  ;;  %p865_p12 = scmp.lt.s32.totalorder %s859_s13, %s859_s13 }
  0x1f   :  { %p866_p13 = por %p865_p12, %p864_p11 }
  0x21   :  { %p867_p0 = pnand %p866_p13, %p860_p10 }
  0x23   :  { %870 = shalt.err (!%p867_p0)
}
  0x24   :  { %30 = dma.hbm_to_vmem [thread:$0]  %s1102_s0, 128, %s28_s27, [#allocation3]  }
  0x25   :  { %s966_s15 = smov [#allocation7]   ;;  %s967_s17 = smov [#allocation10]  }
  0x26   :  { %s51_s16 = sshll.u32 %s966_s15, 4  ;;  %s70_s18 = sshll.u32 %s967_s17, 4  ;;  %s52_s16 = int_to_ptr.vmem [resolvable:$true] %s51_s16  ;;  %s71_s18 = int_to_ptr.vmem [resolvable:$true] %s70_s18 }
  0x27   :  { %s879_s19 = scalar_lea.vmem %s52_s16, 16  ;;  %s883_s4 = scalar_lea.vmem %s52_s16, 32 }
  0x28   :  { %p880_p1 = scmp.ne.s32.totalorder %s52_s16, %s879_s19  ;;  %p884_p2 = scmp.lt.s32.totalorder %s52_s16, %s52_s16 }
  0x29   :  { %p885_p3 = scmp.lt.s32.totalorder %s883_s4, %s879_s19 }
  0x2b   :  { %p886_p4 = por %p885_p3, %p884_p2 }
  0x2d   :  { %p887_p5 = pnand %p886_p4, %p880_p1 }
  0x2f   :  { %890 = shalt.err (!%p887_p5)
}
  0x30   :  { %54 = dma.hbm_to_vmem [thread:$0]  %s1105_s3, 16, %s52_s16, [#allocation6]  }
  0x31   :  { %s899_s24 = scalar_lea.vmem %s71_s18, 2048  ;;  %p904_p7 = scmp.lt.s32.totalorder %s71_s18, %s71_s18 }
  0x32   :  { %p900_p6 = scmp.ne.s32.totalorder %s71_s18, %s899_s24  ;;  %p905_p8 = scmp.lt.s32.totalorder %s899_s24, %s899_s24 }
  0x34   :  { %p906_p9 = por %p905_p8, %p904_p7 }
  0x36   :  { %p907_p10 = pnand %p906_p9, %p900_p6 }
  0x38   :  { %910 = shalt.err (!%p907_p10)
}
  0x39   :  { %s968_s0 = smov 128   ;;  %s969_s25 = smov 8  }
  0x3a   :  { %76 = dma.hbm_to_vmem [thread:$0]  %s1107_s5, 2048, %s71_s18, [#allocation9], %s968_s0, %s968_s0, %s969_s25  }
  0x3b   :  { %s970_s28 = smov [#allocation11]  }
  0x3c   :  { %s88_s29 = sshll.u32 %s970_s28, 4  ;;  %s89_s29 = int_to_ptr.vmem [resolvable:$true] %s88_s29 }
  0x3d   :  { %s919_s30 = scalar_lea.vmem %s89_s29, 2048  ;;  %p924_p12 = scmp.lt.s32.totalorder %s89_s29, %s89_s29 }
  0x3e   :  { %p920_p11 = scmp.ne.s32.totalorder %s89_s29, %s919_s30  ;;  %p925_p13 = scmp.lt.s32.totalorder %s919_s30, %s919_s30 }
  0x40   :  { %p926_p0 = por %p925_p13, %p924_p12 }
  0x42   :  { %p927_p1 = pnand %p926_p0, %p920_p11 }
  0x44   :  { %930 = shalt.err (!%p927_p1)
}
  0x45   :  { %94 = dma.hbm_to_vmem [thread:$0]  %s1111_s9, 2048, %s89_s29, [#allocation12], %s962_s20, %s962_s20, %s963_s21  }
  0x46   :  { %951 = dma.done.wait [#allocation3], 128  }
  0x47   :  { %952 = vsyncadd [#allocation3], 4294967168 }
  0x48   :  { %953 = dma.done.wait [#allocation6], 144  }
  0x49   :  { %954 = vsyncadd [#allocation6], 4294967152 }
  0x4a   :  { %955 = dma.done.wait [#allocation9], 2064  }
  0x4b   :  { %956 = vsyncadd [#allocation9], 4294965232 }
  0x4c   :  { %957 = dma.done.wait [#allocation12], 2048  }
  0x4d   :  { %958 = vsyncadd [#allocation12], 4294965248  ;;  %v971_v0 = vmov 0.0   ;;  %vm972_vm0 = vmmov 0   ;;  %v762_v1 = vld [vmem:[#allocation5] sm:$0xff]   ;;  %v116_v2 = vld [vmem:[#allocation2] sm:$0xff]  ;;  %v206_v48 = vlaneseq }
  0x4e   :  { %741 = vmatprep.subr.bf16.mxu0 %v971_v0  ;;  %743 = vmatprep.mubr.msk.bf16.mxu0 %vm972_vm0, %v971_v0  ;;  %v117_v3 = vpack.c.bf16 %v116_v2, %v116_v2  ;;  %vm133_vm1 = vcmask 130048   ;;  %v763_v4 = vld [vmem:[#allocation10 + $0x74] ss:$8 sps:$4 sm:$0xff]   ;;  %v765_v5 = vld [vmem:[#allocation10 + $0x70] ss:$8 sps:$4 sm:$0xff]   ;;  %v973_v9 = vmov 0  }
  0x4f   :  { %742 = vmatpush3.bf16.msra.mxu0 %v762_v1  ;;  %v766_v6 = vld [vmem:[#allocation10 + $0x64] ss:$8 sps:$4 sm:$0xff]   ;;  %328 = vmatprep.subr.bf16.mxu1 %v763_v4  ;;  %v768_v7 = vld [vmem:[#allocation10 + $0x60] ss:$8 sps:$4 sm:$0xff]   ;;  %v769_v8 = vld [vmem:[#allocation10 + $0x54] ss:$8 sps:$4 sm:$0xff]  }
  0x50   :  { %329 = vmatpush1.bf16.msra.mxu1 %v765_v5  ;;  %360 = vmatprep.mubr.bf16.mxu1 %v973_v9  ;;  %v771_v10 = vld [vmem:[#allocation10 + $0x50] ss:$8 sps:$4 sm:$0xff]   ;;  %v772_v11 = vld [vmem:[#allocation10 + $0x44] ss:$8 sps:$4 sm:$0xff]   ;;  %v774_v12 = vld [vmem:[#allocation10 + $0x40] ss:$8 sps:$4 sm:$0xff]  }
  0x51   :  { %330 = vmatprep.subr.bf16.mxu1 %v766_v6  ;;  %v775_v13 = vld [vmem:[#allocation10 + $0x34] ss:$8 sps:$4 sm:$0xff]   ;;  %v777_v14 = vld [vmem:[#allocation10 + $0x30] ss:$8 sps:$4 sm:$0xff]   ;;  %v778_v15 = vld [vmem:[#allocation10 + $0x24] ss:$8 sps:$4 sm:$0xff]  }
  0x52   :  { %744 = vmatmul.mubr.msk.bf16.vlgmr.msra.gmra.mxu0 %vm133_vm1, %v117_v3  ;;  %v780_v16 = vld [vmem:[#allocation10 + $0x20] ss:$8 sps:$4 sm:$0xff]   ;;  %v781_v17 = vld [vmem:[#allocation10 + $0x14] ss:$8 sps:$4 sm:$0xff]   ;;  %v783_v18 = vld [vmem:[#allocation10 + $0x10] ss:$8 sps:$4 sm:$0xff]  }
  0x53   :  { %v784_v19 = vld [vmem:[#allocation10 + $0x4] ss:$8 sps:$4 sm:$0xff]   ;;  %v786_v20 = vld [vmem:[#allocation10] ss:$8 sps:$4 sm:$0xff]   ;;  %v1063_v49 = vshrl.u32 %v206_v48, 7  ;;  %v787_v62 = vld [vmem:[#allocation11 + $0x78] sm:$0xff]  }
  0x54   :  { %331 = vmatpush1.bf16.msra.mxu1 %v768_v7  ;;  %v681_v21 = vld [vmem:[%s1104_s2] ss:$0 sm:$0xff]  ;;  %v195_v50 = vld [vmem:[#allocation7] sm:$0x1]  ;;  %v196_v54 = vld [vmem:[#allocation8] sm:$0x1]  ;;  %719 = vmatprep.subr.bf16.mxu0 %v787_v62 }
  0x55   :  { %332 = vmatprep.subr.bf16.mxu1 %v769_v8  ;;  %v1066_v51 = vsub.s32 0, %v1063_v49  ;;  %v788_v63 = vld [vmem:[#allocation11 + $0x38] sm:$0xff]   ;;  %v789_v0 = vld [vmem:[#allocation11 + $0x70] sm:$0xff]   ;;  %v791_v2 = vld [vmem:[#allocation11 + $0x68] sm:$0xff]  }
  0x56   :  { %720 = vmatpush3.bf16.msra.mxu0 %v788_v63  ;;  %v790_v1 = vld [vmem:[#allocation11 + $0x30] sm:$0xff]   ;;  %v792_v3 = vld [vmem:[#allocation11 + $0x28] sm:$0xff]   ;;  %v793_v4 = vld [vmem:[#allocation11 + $0x60] sm:$0xff]  }
  0x57   :  { %721 = vmatprep.subr.bf16.mxu0 %v789_v0  ;;  %v794_v5 = vld [vmem:[#allocation11 + $0x20] sm:$0xff]   ;;  %v795_v6 = vld [vmem:[#allocation11 + $0x58] sm:$0xff]   ;;  %v797_v8 = vld [vmem:[#allocation11 + $0x50] sm:$0xff]  }
  0x58   :  { %333 = vmatpush1.bf16.msra.mxu1 %v771_v10  ;;  %v796_v7 = vld [vmem:[#allocation11 + $0x18] sm:$0xff]   ;;  %v798_v9 = vld [vmem:[#allocation11 + $0x10] sm:$0xff]   ;;  %v799_v10 = vld [vmem:[#allocation11 + $0x48] sm:$0xff]  }
  0x59   :  { %334 = vmatprep.subr.bf16.mxu1 %v772_v11  ;;  %v800_v11 = vld [vmem:[#allocation11 + $0x8] sm:$0xff]  }
  0x5a   :  { %722 = vmatpush3.bf16.msra.mxu0 %v790_v1 }
  0x5b   :  { %723 = vmatprep.subr.bf16.mxu0 %v791_v2 }
  0x5c   :  { %335 = vmatpush1.bf16.msra.mxu1 %v774_v12  ;;  %v801_v12 = vld [vmem:[#allocation11 + $0x40] sm:$0xff]  }
  0x5d   :  { %336 = vmatprep.subr.bf16.mxu1 %v775_v13  ;;  %v802_v13 = vld [vmem:[#allocation11] sm:$0xff]  }
  0x5e   :  { %724 = vmatpush3.bf16.msra.mxu0 %v792_v3 }
  0x5f   :  { %725 = vmatprep.subr.bf16.mxu0 %v793_v4  ;;  %v974_v4 = vmov 1966171168  }
  0x60   :  { %337 = vmatpush1.bf16.msra.mxu1 %v777_v14  ;;  %v236_v14 = vld [vmem:[%s1108_s6] sm:$0x3] }
  0x61   :  { %338 = vmatprep.subr.bf16.mxu1 %v778_v15  ;;  %v1074_v15 = vsub.s32 1, %v1063_v49 }
  0x62   :  { %726 = vmatpush3.bf16.msra.mxu0 %v794_v5  ;;  %v421_v5 = vunpack.c.l.s4 %v974_v4 }
  0x63   :  { %727 = vmatprep.subr.bf16.mxu0 %v795_v6 }
  0x64   :  { %339 = vmatpush1.bf16.msra.mxu1 %v780_v16  ;;  %v241_v16 = vrot.slane %v236_v14, %v1066_v51  ;;  %v422_v6 = vunpack.c.0.s8 %v421_v5 }
  0x65   :  { %340 = vmatprep.subr.bf16.mxu1 %v781_v17  ;;  %v245_v17 = vrot.slane %v236_v14, %v1074_v15 }
  0x66   :  { %728 = vmatpush3.bf16.msra.mxu0 %v796_v7 }
  0x67   :  { %729 = vmatprep.subr.bf16.mxu0 %v797_v8  ;;  %v425_v8 = vsub.s32 %v422_v6, %v1063_v49  ;;  %v406_v49 = vld [vmem:[%s1110_s8] sm:$0x3]  ;;  %s975_s8 = smov [#allocation13]  }
  0x68   :  { %341 = vmatpush1.bf16.msra.mxu1 %v783_v18  ;;  %s669_s15 = sshll.u32 %s975_s8, 4  ;;  %s670_s15 = int_to_ptr.vmem [resolvable:$true] %s669_s15 }
  0x69   :  { %342 = vmatprep.subr.bf16.mxu1 %v784_v19  ;;  %s931_s16 = scalar_lea.vmem %s670_s15, 64  ;;  %p936_p3 = scmp.lt.s32.totalorder %s670_s15, %s670_s15 }
  0x6a   :  { %730 = vmatpush3.bf16.msra.mxu0 %v798_v9  ;;  %p932_p2 = scmp.ne.s32.totalorder %s670_s15, %s931_s16  ;;  %p937_p4 = scmp.lt.s32.totalorder %s931_s16, %s931_s16 }
  0x6b   :  { %731 = vmatprep.subr.bf16.mxu0 %v799_v10 }
  0x6c   :  { %343 = vmatpush1.bf16.msra.mxu1 %v786_v20  ;;  %p938_p5 = por %p937_p4, %p936_p3 }
  0x6e   :  { %732 = vmatpush3.bf16.msra.mxu0 %v800_v11  ;;  %p939_p6 = pnand %p938_p5, %p932_p2 }
  0x6f   :  { %733 = vmatprep.subr.bf16.mxu0 %v801_v12  ;;  %v405_v12 = vld [vmem:[%s1109_s7] sm:$0x3] }
  0x72   :  { %734 = vmatpush3.bf16.msra.mxu0 %v802_v13 }
 0x112   :  { %v171_v22 = vpop.f32.mrf.mxu0 }
 0x113   :  { %v172_v23 = vadd.f32 %v681_v21, %v171_v22 }
 0x114   :  { %v745_v24 = vpop.f32.mrf.mxu0 }
 0x115   :  { %vm177_vm2 = vcmp.gt.f32.partialorder %v172_v23, 0.0  ;;  %v178_v25 = vmul.f32 0.2, %v172_v23 }
 0x116   :  { %v174_v26 = vpop.f32.mrf.mxu0 }
 0x117   :  { %v179_v27 = vsel %vm177_vm2, %v172_v23, %v178_v25 }
 0x118   :  { %v180_v28 = vrot.slane %v179_v27, 4  ;;  %v187_v29 = vmul.f32 %v179_v27, %v179_v27  ;;  %v746_v30 = vpop.f32.mrf.mxu0 }
 0x11a   :  { %v181_v31 = vadd.f32 %v180_v28, %v179_v27  ;;  %v188_v32 = vrot.slane %v187_v29, 4 }
 0x11c   :  { %v182_v33 = vrot.slane %v181_v31, 2  ;;  %v189_v34 = vadd.f32 %v188_v32, %v187_v29 }
 0x11e   :  { %v183_v35 = vadd.f32 %v182_v33, %v181_v31  ;;  %v190_v36 = vrot.slane %v189_v34, 2 }
 0x120   :  { %v184_v37 = vrot.slane %v183_v35, 1  ;;  %v191_v38 = vadd.f32 %v190_v36, %v189_v34 }
 0x122   :  { %v192_v39 = vrot.slane %v191_v38, 1  ;;  %v185_v40 = vadd.f32 %v184_v37, %v183_v35 }
 0x124   :  { %v193_v41 = vadd.f32 %v192_v39, %v191_v38  ;;  %v186_v42 = vmul.f32 0.125, %v185_v40 }
 0x126   :  { %v194_v43 = vmul.f32 0.125, %v193_v41  ;;  %v197_v44 = vmul.f32 %v186_v42, %v186_v42 }
 0x128   :  { %v198_v45 = vsub.f32 %v194_v43, %v197_v44 }
 0x12a   :  { %v199_v46 = vmax.f32 %v198_v45, 0.0 }
 0x12c   :  { %v200_v47 = vadd.f32 1e-05, %v199_v46 }
 0x12e   :  { %803 = vrsqrt.f32 %v200_v47 }
 0x13b   :  { %v804_v52 = vpop.eup %803 }
 0x13c   :  { %v202_v53 = vmul.f32 %v804_v52, %v195_v50 }
 0x13e   :  { %v203_v55 = vmul.f32 %v202_v53, %v186_v42  ;;  %v209_v56 = vrot.slane %v202_v53, %v1066_v51 }
 0x140   :  { %v204_v57 = vsub.f32 %v196_v54, %v203_v55  ;;  %v211_v58 = vmul.f32 %v209_v56, %v179_v27 }
 0x142   :  { %v216_v59 = vrot.slane %v204_v57, %v1066_v51 }
 0x144   :  { %v218_v60 = vadd.f32 %v216_v59, %v211_v58 }
 0x146   :  { %v219_v61 = vpack.c.bf16 %v218_v60, %v218_v60 }
 0x148   :  { %361 = vmatmul.mubr.bf16.vlgmr.msra.gmra.mxu1 %v219_v61 }
 0x208   :  { %v362_v18 = vpop.f32.mrf.mxu1 }
 0x209   :  { %v363_v19 = vadd.f32 %v362_v18, %v241_v16 }
 0x20a   :  { %v364_v20 = vpop.f32.mrf.mxu1 }
 0x20b   :  { %vm369_vm3 = vcmp.gt.f32.partialorder %v363_v19, 0.0  ;;  %v371_v21 = vmul.f32 0.2, %v363_v19  ;;  %v365_v22 = vadd.f32 %v364_v20, %v245_v17 }
 0x20c   :  { %v366_v23 = vpop.f32.mrf.mxu1 }
 0x20d   :  { %v1078_v24 = vsel %vm369_vm3, %v363_v19, %v371_v21  ;;  %vm370_vm4 = vcmp.gt.f32.partialorder %v365_v22, 0.0  ;;  %v372_v25 = vmul.f32 0.2, %v365_v22 }
 0x20e   :  { %v375_v26 = vrot.slane %v1078_v24, 4  ;;  %v389_v27 = vmul.f32 %v1078_v24, %v1078_v24  ;;  %v367_v28 = vpop.f32.mrf.mxu1 }
 0x20f   :  { %v374_v29 = vsel %vm370_vm4, %v365_v22, %v372_v25 }
 0x210   :  { %v376_v30 = vadd.f32 %v375_v26, %v1078_v24  ;;  %v391_v31 = vrot.slane %v389_v27, 4  ;;  %v381_v32 = vrot.slane %v374_v29, 4  ;;  %v390_v33 = vmul.f32 %v374_v29, %v374_v29 }
 0x212   :  { %v377_v34 = vrot.slane %v376_v30, 2  ;;  %v392_v35 = vadd.f32 %v391_v31, %v389_v27  ;;  %v382_v36 = vadd.f32 %v381_v32, %v374_v29  ;;  %v397_v37 = vrot.slane %v390_v33, 4 }
 0x214   :  { %v378_v38 = vadd.f32 %v377_v34, %v376_v30  ;;  %v393_v39 = vrot.slane %v392_v35, 2  ;;  %v383_v40 = vrot.slane %v382_v36, 2  ;;  %v398_v41 = vadd.f32 %v397_v37, %v390_v33 }
 0x216   :  { %v379_v42 = vrot.slane %v378_v38, 1  ;;  %v394_v43 = vadd.f32 %v393_v39, %v392_v35  ;;  %v384_v44 = vadd.f32 %v383_v40, %v382_v36  ;;  %v399_v45 = vrot.slane %v398_v41, 2  ;;  %v700_v35 = vld [vmem:[%s1112_s10] ss:$0 sm:$0xff] }
 0x218   :  { %v380_v46 = vadd.f32 %v379_v42, %v378_v38  ;;  %v395_v47 = vrot.slane %v394_v43, 1  ;;  %v385_v48 = vrot.slane %v384_v44, 1  ;;  %v400_v50 = vadd.f32 %v399_v45, %v398_v41 }
 0x21a   :  { %v387_v52 = vmul.f32 0.125, %v380_v46  ;;  %v396_v53 = vadd.f32 %v395_v47, %v394_v43  ;;  %v401_v54 = vrot.slane %v400_v50, 1  ;;  %v386_v55 = vadd.f32 %v385_v48, %v384_v44 }
 0x21c   :  { %v403_v56 = vmul.f32 0.125, %v396_v53  ;;  %v407_v57 = vmul.f32 %v387_v52, %v387_v52  ;;  %v402_v58 = vadd.f32 %v401_v54, %v400_v50  ;;  %v388_v59 = vmul.f32 0.125, %v386_v55 }
 0x21e   :  { %v409_v60 = vsub.f32 %v403_v56, %v407_v57  ;;  %v404_v61 = vmul.f32 0.125, %v402_v58  ;;  %v408_v62 = vmul.f32 %v388_v59, %v388_v59 }
 0x220   :  { %v411_v63 = vmax.f32 %v409_v60, 0.0  ;;  %v410_v0 = vsub.f32 %v404_v61, %v408_v62 }
 0x222   :  { %v413_v1 = vadd.f32 1e-05, %v411_v63  ;;  %v412_v2 = vmax.f32 %v410_v0, 0.0 }
 0x224   :  { %v414_v3 = vadd.f32 1e-05, %v412_v2  ;;  %805 = vrsqrt.f32 %v413_v1 }
 0x226   :  { %807 = vrsqrt.f32 %v414_v3 }
 0x231   :  { %v806_v7 = vpop.eup %805 }
 0x233   :  { %v808_v9 = vpop.eup %807 }
 0x234   :  { %v419_v10 = vcombine.low %v806_v7, %v808_v9 }
 0x236   :  { %v426_v11 = vrot.slane %v419_v10, %v425_v8 }
 0x238   :  { %v433_v13 = vrot.slane %v426_v11, %v425_v8 }
 0x23a   :  { %v435_v14 = vmul.f32 %v433_v13, %v405_v12 }
 0x23c   :  { %v440_v16 = vrot.slane %v435_v14, %v1066_v51  ;;  %v444_v17 = vrot.slane %v435_v14, %v1074_v15 }
 0x23e   :  { %v447_v18 = vmul.f32 %v440_v16, %v387_v52  ;;  %v448_v19 = vmul.f32 %v444_v17, %v388_v59  ;;  %v469_v25 = vmul.f32 %v444_v17, %v374_v29  ;;  %v468_v27 = vmul.f32 %v440_v16, %v1078_v24 }
 0x240   :  { %v451_v20 = vcombine.low %v447_v18, %v448_v19 }
 0x242   :  { %v458_v21 = vrot.slane %v451_v20, %v425_v8 }
 0x244   :  { %v465_v22 = vrot.slane %v458_v21, %v425_v8 }
 0x246   :  { %v467_v23 = vsub.f32 %v406_v49, %v465_v22 }
 0x248   :  { %v478_v26 = vrot.slane %v467_v23, %v1074_v15  ;;  %v474_v28 = vrot.slane %v467_v23, %v1066_v51 }
 0x24a   :  { %v482_v30 = vadd.f32 %v478_v26, %v469_v25  ;;  %v481_v31 = vadd.f32 %v474_v28, %v468_v27 }
 0x24c   :  { %v484_v32 = vpack.c.bf16 %v482_v30, %v482_v30  ;;  %v483_v33 = vpack.c.bf16 %v481_v31, %v481_v31 }
 0x24e   :  { %652 = vmatprep.mubr.bf16.mxu0 %v484_v32 }
 0x24f   :  { %653 = vmatmul.mubr.bf16.vlgmr.msra.gmra.mxu0 %v483_v33 }
 0x30f   :  { %v735_v34 = vpop.f32.mrf.mxu0 }
 0x311   :  { %v736_v36 = vpop.f32.mrf.mxu0 }
 0x312   :  { %v737_v37 = vadd.f32 %v736_v36, %v735_v34 }
 0x313   :  { %v738_v29 = vpop.f32.mrf.mxu0 }
 0x314   :  { %v655_v38 = vadd.f32 %v737_v37, %v700_v35 }
 0x315   :  { %v739_v15 = vpop.f32.mrf.mxu0 }
 0x316   :  { %809 = vtanh.f32 %v655_v38 }
 0x323   :  { %v810_v51 = vpop.eup %809 }
 0x324   :  { %v661_v24 = vpack.c.bf16 %v810_v51, %v810_v51 }
 0x326   :  { %662 = vst [vmem:[#allocation13] sm:$0xf] %v661_v24 }
 0x327   :  { %942 = shalt.err (!%p939_p6)
}
 0x328   :  { %672 = dma.vmem_to_hbm [thread:$0]  %s670_s15, 64, %s1113_s11, [#allocation4]  }
 0x329   :  { %959 = dma.done.wait [#allocation4], 64  }
 0x32a   :  { %960 = vsyncadd [#allocation4], 4294967232 }
 0x32b   :  { %676 = vsyncpa [#allocation3], 1 }
 0x32c   :  { %677 = vsyncpa [#allocation6], 1 }
 0x32d   :  { %678 = vsyncpa [#allocation9], 1 }
 0x32e   :  { %679 = vsyncpa [#allocation12], 1 }
 0x32f   :  { %680 = vsyncpa [#allocation4], 1 }

</bundles_post_ra>
